<compile_context>
chip_gen: v7x
topology: tpu7x:2x2x1
jax: 0.10.0
libtpu: 0.0.40
codegen_flags: <defaults>
</compile_context>

<pallas_src>
import jax
import jax.numpy as jnp
from jax.experimental import pallas as pl
from jax.experimental.pallas import tpu as pltpu

EPS = 1e-5  # matches torch.nn.functional.layer_norm default


def _layernorm_kernel(x_ref, gamma_ref, beta_ref, o_ref):
    # Single pass over x: both reductions issue from the same load stream,
    # output is a single fused elementwise expression (no `centered` temp).
    x = x_ref[...].astype(jnp.float32)                  # (tile_rows, dim)
    inv_dim = jnp.float32(1.0 / x.shape[-1])
    mean = jnp.sum(x, axis=-1, keepdims=True) * inv_dim
    mean_sq = jnp.sum(x * x, axis=-1, keepdims=True) * inv_dim
    var = jnp.maximum(mean_sq - mean * mean, 0.0)       # biased var; clamp cancellation
    inv = jax.lax.rsqrt(var + EPS)
    g = gamma_ref[...].astype(jnp.float32)              # (1, dim), resident
    b = beta_ref[...].astype(jnp.float32)               # (1, dim), resident
    o_ref[...] = ((x - mean) * inv * g + b).astype(o_ref.dtype)


def _round_up(n, m):
    return ((n + m - 1) // m) * m


def _vmem_capacity_bytes():
    """Physical per-core VMEM; conservative fallback (v7x = 64 MiB/TC)."""
    try:
        info = pltpu.get_tpu_info()
        cap = getattr(info, "vmem_capacity_bytes", None)
        if cap:
            return int(cap)
    except Exception:
        pass
    return 64 << 20


def _choose_tiling(n_rows, dim, itemsize):
    """Pick (tile_rows, vmem_limit_bytes) from the chip's VMEM capacity.

    Per-row VMEM footprint counted explicitly:
      - double-buffered input block  : 2 * dim * itemsize
      - double-buffered output block : 2 * dim * itemsize
      - in-kernel f32 temporaries    : ~2 * dim * 4   (x_f32 + fused out expr)
    """
    pack = max(8, 32 // max(int(itemsize), 1))          # 8 (f32) / 16 (bf16) / 32 (i8)
    vmem_cap = _vmem_capacity_bytes()
    # Request <= 75% of physical VMEM, capped at 96 MiB (128 MiB parts) and
    # landing at 48 MiB on v7x's 64 MiB-per-TC parts.
    vmem_limit = min(96 << 20, (vmem_cap * 3) // 4)
    usable = (vmem_limit * 3) // 4                      # headroom for compiler scratch
    bytes_per_row = dim * (4 * itemsize + 2 * 4)
    max_rows = max(pack, usable // bytes_per_row)
    tile_rows = min(int(max_rows), 4096, _round_up(n_rows, pack))
    tile_rows = max(pack, (tile_rows // pack) * pack)
    return tile_rows, int(vmem_limit)


def layer_norm(x, gamma, beta, *, tile_rows=None):
    """x: (..., dim). gamma/beta: (dim,). Returns same shape/dtype as x."""
    orig_shape = x.shape
    dim = orig_shape[-1]
    x2 = x.reshape(-1, dim)
    n_rows = x2.shape[0]
    itemsize = jnp.dtype(x.dtype).itemsize

    auto_rows, vmem_limit = _choose_tiling(n_rows, dim, itemsize)
    if tile_rows is None:
        tile_rows = auto_rows

    gamma2 = gamma.reshape(1, dim)
    beta2 = beta.reshape(1, dim)

    # Partial edge block is fine: the reduction is strictly per-row, so padded
    # garbage rows never contaminate valid rows.
    grid = (pl.cdiv(n_rows, tile_rows),)

    out = pl.pallas_call(
        _layernorm_kernel,
        out_shape=jax.ShapeDtypeStruct((n_rows, dim), x.dtype),
        grid_spec=pltpu.PrefetchScalarGridSpec(
            num_scalar_prefetch=0,
            grid=grid,
            in_specs=[
                pl.BlockSpec((tile_rows, dim), lambda i: (i, 0)),
                pl.BlockSpec((1, dim), lambda i: (0, 0)),   # gamma, resident
                pl.BlockSpec((1, dim), lambda i: (0, 0)),   # beta, resident
            ],
            out_specs=pl.BlockSpec((tile_rows, dim), lambda i: (i, 0)),
        ),
        compiler_params=pltpu.CompilerParams(
            dimension_semantics=("parallel",),
            vmem_limit_bytes=vmem_limit,
        ),
    )(x2, gamma2, beta2)

    return out.reshape(orig_shape)


if __name__ == "__main__":
    key = jax.random.PRNGKey(0)
    batch, seq, dim = 2, 8, 32

    x = jax.random.normal(key, (batch, seq, dim), dtype=jnp.float32)
    # Deterministic parameter init matching the module's __init__:
    gamma = jnp.ones((dim,), dtype=jnp.float32)   # nn.Parameter(torch.ones(dim))
    beta = jnp.zeros((dim,), dtype=jnp.float32)   # registered buffer torch.zeros(dim)

    out = layer_norm(x, gamma, beta)
    jax.block_until_ready(out)

    # Reference check against plain-JAX layer norm (same semantics as F.layer_norm).
    mean = jnp.mean(x, axis=-1, keepdims=True)
    var = jnp.mean((x - mean) ** 2, axis=-1, keepdims=True)
    ref = (x - mean) / jnp.sqrt(var + EPS) * gamma + beta
    assert jnp.allclose(out, ref, atol=1e-5, rtol=1e-5), "mismatch vs reference"

    print("KERNEL_OK")
</pallas_src>

<mosaic_0001>
module attributes {stable_mosaic.version = 11 : i64} {
  func.func @_layernorm_kernel(%arg0: i32, %arg1: memref<16x32xf32, #tpu.memory_space<vmem>>, %arg2: memref<1x32xf32, #tpu.memory_space<vmem>>, %arg3: memref<1x32xf32, #tpu.memory_space<vmem>>, %arg4: memref<16x32xf32, #tpu.memory_space<vmem>>) attributes {dimension_semantics = [#tpu.dimension_semantics<parallel>], iteration_bounds = array<i64: 1>, scalar_prefetch = 0 : i64, scratch_operands = 0 : i64, tpu.core_type = #tpu.core_type<tc>, window_params = [{transform_indices = @transform_0, window_bounds = array<i64: 16, 32>}, {pipeline_mode = #tpu.pipeline_mode<synchronous>, transform_indices = @transform_1, window_bounds = array<i64: 1, 32>}, {pipeline_mode = #tpu.pipeline_mode<synchronous>, transform_indices = @transform_2, window_bounds = array<i64: 1, 32>}, {transform_indices = @transform_3, window_bounds = array<i64: 16, 32>}]} {
    %c0 = arith.constant 0 : index
    %c0_0 = arith.constant 0 : index
    %0 = vector.load %arg1[%c0, %c0_0] : memref<16x32xf32, #tpu.memory_space<vmem>>, vector<16x32xf32>
    %cst = arith.constant dense<0.000000e+00> : vector<16xf32>
    %1 = vector.multi_reduction <add>, %0, %cst [1] : vector<16x32xf32> to vector<16xf32>
    %2 = vector.shape_cast %1 : vector<16xf32> to vector<16x1xf32>
    %cst_1 = arith.constant 3.125000e-02 : f32
    %3 = vector.broadcast %cst_1 : f32 to vector<16x1xf32>
    %4 = arith.mulf %2, %3 : vector<16x1xf32>
    %5 = arith.mulf %0, %0 : vector<16x32xf32>
    %cst_2 = arith.constant dense<0.000000e+00> : vector<16xf32>
    %6 = vector.multi_reduction <add>, %5, %cst_2 [1] : vector<16x32xf32> to vector<16xf32>
    %7 = vector.shape_cast %6 : vector<16xf32> to vector<16x1xf32>
    %cst_3 = arith.constant 3.125000e-02 : f32
    %8 = vector.broadcast %cst_3 : f32 to vector<16x1xf32>
    %9 = arith.mulf %7, %8 : vector<16x1xf32>
    %10 = arith.mulf %4, %4 : vector<16x1xf32>
    %11 = arith.subf %9, %10 : vector<16x1xf32>
    %cst_4 = arith.constant 0.000000e+00 : f32
    %12 = vector.broadcast %cst_4 : f32 to vector<16x1xf32>
    %13 = arith.maximumf %11, %12 : vector<16x1xf32>
    %cst_5 = arith.constant 9.99999974E-6 : f32
    %14 = vector.broadcast %cst_5 : f32 to vector<16x1xf32>
    %15 = arith.addf %13, %14 : vector<16x1xf32>
    %16 = math.rsqrt %15 : vector<16x1xf32>
    %c0_6 = arith.constant 0 : index
    %c0_7 = arith.constant 0 : index
    %17 = vector.load %arg2[%c0_6, %c0_7] : memref<1x32xf32, #tpu.memory_space<vmem>>, vector<1x32xf32>
    %c0_8 = arith.constant 0 : index
    %c0_9 = arith.constant 0 : index
    %18 = vector.load %arg3[%c0_8, %c0_9] : memref<1x32xf32, #tpu.memory_space<vmem>>, vector<1x32xf32>
    %19 = vector.broadcast %4 : vector<16x1xf32> to vector<16x32xf32>
    %20 = arith.subf %0, %19 : vector<16x32xf32>
    %21 = vector.broadcast %16 : vector<16x1xf32> to vector<16x32xf32>
    %22 = arith.mulf %20, %21 : vector<16x32xf32>
    %23 = vector.broadcast %17 : vector<1x32xf32> to vector<16x32xf32>
    %24 = arith.mulf %22, %23 : vector<16x32xf32>
    %25 = vector.broadcast %18 : vector<1x32xf32> to vector<16x32xf32>
    %26 = arith.addf %24, %25 : vector<16x32xf32>
    %c0_10 = arith.constant 0 : index
    %c0_11 = arith.constant 0 : index
    %27 = vector.load %arg4[%c0_10, %c0_11] : memref<16x32xf32, #tpu.memory_space<vmem>>, vector<16x32xf32>
    tpu.vector_store %arg4[%c0_10, %c0_11], %26 {strides = array<i32>} : memref<16x32xf32, #tpu.memory_space<vmem>>, vector<16x32xf32>,
    return
  }
  func.func @transform_0(%arg0: i32) -> (i32, i32) {
    %c0_i32 = arith.constant 0 : i32
    %c0_i32_0 = arith.constant 0 : i32
    return %arg0, %c0_i32 : i32, i32
  }
  func.func @transform_1(%arg0: i32) -> (i32, i32) {
    %c0_i32 = arith.constant 0 : i32
    %c0_i32_0 = arith.constant 0 : i32
    %c0_i32_1 = arith.constant 0 : i32
    return %c0_i32, %c0_i32_0 : i32, i32
  }
  func.func @transform_2(%arg0: i32) -> (i32, i32) {
    %c0_i32 = arith.constant 0 : i32
    %c0_i32_0 = arith.constant 0 : i32
    %c0_i32_1 = arith.constant 0 : i32
    return %c0_i32, %c0_i32_0 : i32, i32
  }
  func.func @transform_3(%arg0: i32) -> (i32, i32) {
    %c0_i32 = arith.constant 0 : i32
    %c0_i32_0 = arith.constant 0 : i32
    return %arg0, %c0_i32 : i32, i32
  }
}

</mosaic_0001>

<bundles_post_ra>
// kernel: tpu_custom_call.1
= control target key start
LH: loop header
LB: loop body
LE: loop exit
PB: predicated region body
PF: predicated region fallthrough
CT: control target
= control target key end

     0   :  { %8 = vsyncpa [#allocation3], 0  ;;  %s225_s0 = inlined_call_operand.hbm [shape: f32[16,32], index: 0, kind: input, shape index: {}]   ;;  %s226_s1 = inlined_call_operand.vmem [shape: f32[1,32], index: 1, kind: input, shape index: {}]   ;;  %s227_s2 = inlined_call_operand.vmem [shape: f32[1,32], index: 2, kind: input, shape index: {}]   ;;  %s228_s3 = inlined_call_operand.hbm [shape: f32[16,32], index: 3, kind: output, shape index: {}]  }
   0x1   :  { %9 = vsyncpa [#allocation4], 0  ;;  %s159_s12 = smov [#allocation2]   ;;  %s111_s16 = scalar_lea.hbm %s225_s0, 256 }
   0x2   :  { %s15_s13 = sshll.u32 %s159_s12, 4  ;;  %p112_p0 = scmp.ne.s32.totalorder %s225_s0, %s111_s16  ;;  %s16_s13 = int_to_ptr.vmem [resolvable:$true] %s15_s13 }
   0x3   :  { %p115_p1 = scmp.lt.u32.totalorder %s111_s16, %s225_s0 }
   0x5   :  { %p117_p2 = pnand %p115_p1, %p112_p0 }
   0x7   :  { %120 = shalt.err (!%p117_p2)
}
   0x8   :  { %s121_s21 = scalar_lea.vmem %s16_s13, 256  ;;  %p126_p4 = scmp.lt.s32.totalorder %s16_s13, %s16_s13 }
   0x9   :  { %p122_p3 = scmp.ne.s32.totalorder %s16_s13, %s121_s21  ;;  %p127_p5 = scmp.lt.s32.totalorder %s121_s21, %s121_s21 }
   0xb   :  { %p128_p6 = por %p127_p5, %p126_p4 }
   0xd   :  { %p129_p7 = pnand %p128_p6, %p122_p3 }
   0xf   :  { %132 = shalt.err (!%p129_p7)
}
  0x10   :  { %s160_s22 = smov 128   ;;  %s161_s23 = smov 8  }
  0x11   :  { %21 = dma.hbm_to_vmem [thread:$0]  %s225_s0, 256, %s16_s13, [#allocation3], %s160_s22, %s160_s22, %s161_s23  }
  0x12   :  { %155 = dma.done.wait [#allocation3], 256  }
  0x13   :  { %156 = vsyncadd [#allocation3], 4294967040  ;;  %vm31_vm0 = vcmask 261120   ;;  %v29_v0 = vld [vmem:[#allocation2] sm:$0xff]  ;;  %v30_v1 = vld [vmem:[#allocation2 + $0x8] sm:$0xff]  ;;  %s162_s29 = smov [#allocation5]  }
  0x14   :  { %v32_v2 = vsel %vm31_vm0, %v29_v0, 0.0  ;;  %v40_v3 = vmul.f32 %v29_v0, %v29_v0  ;;  %v41_v4 = vmul.f32 %v30_v1, %v30_v1  ;;  %v35_v6 = vsel %vm31_vm0, %v30_v1, 0.0  ;;  %v101_v26 = vld [vmem:[%s226_s1] ss:$0 sm:$0xff]  ;;  %s89_s30 = sshll.u32 %s162_s29, 4  ;;  %s90_s30 = int_to_ptr.vmem [resolvable:$true] %s89_s30 }
  0x15   :  { %33 = vadd.xlane.f32.xlu0 %v32_v2  ;;  %v102_v28 = vld [vmem:[%s227_s2] ss:$0 sm:$0xff]  ;;  %s133_s1 = scalar_lea.vmem %s90_s30, 256  ;;  %p138_p9 = scmp.lt.s32.totalorder %s90_s30, %s90_s30 }
  0x16   :  { %v42_v5 = vsel %vm31_vm0, %v40_v3, 0.0  ;;  %v45_v7 = vsel %vm31_vm0, %v41_v4, 0.0  ;;  %p134_p8 = scmp.ne.s32.totalorder %s90_s30, %s133_s1  ;;  %p139_p10 = scmp.lt.s32.totalorder %s133_s1, %s133_s1 }
  0x17   :  { %43 = vadd.xlane.f32.xlu1 %v42_v5 }
  0x18   :  { %p140_p11 = por %p139_p10, %p138_p9 }
  0x19   :  { %36 = vadd.xlane.f32.xlu0 %v35_v6 }
  0x1a   :  { %p141_p12 = pnand %p140_p11, %p134_p8 }
  0x1b   :  { %46 = vadd.xlane.f32.xlu1 %v45_v7 }
  0xa2   :  { %v34_v8 = vpop.xlane.xlu0 %33 }
  0xa3   :  { %v38_v9 = vmul.f32 0.03125, %v34_v8 }
  0xa4   :  { %v44_v10 = vpop.xlane.xlu1 %43 }
  0xa5   :  { %v50_v11 = vmul.f32 %v38_v9, %v38_v9  ;;  %v48_v12 = vmul.f32 0.03125, %v44_v10  ;;  %v62_v24 = vsub.f32 %v29_v0, %v38_v9 }
  0xa6   :  { %v37_v13 = vpop.xlane.xlu0 %36 }
  0xa7   :  { %v52_v14 = vsub.f32 %v48_v12, %v50_v11  ;;  %v39_v15 = vmul.f32 0.03125, %v37_v13 }
  0xa8   :  { %v47_v16 = vpop.xlane.xlu1 %46 }
  0xa9   :  { %v54_v17 = vmax.f32 %v52_v14, 0.0  ;;  %v51_v18 = vmul.f32 %v39_v15, %v39_v15  ;;  %v49_v19 = vmul.f32 0.03125, %v47_v16  ;;  %v63_v29 = vsub.f32 %v30_v1, %v39_v15 }
  0xab   :  { %v56_v20 = vadd.f32 1e-05, %v54_v17  ;;  %v53_v21 = vsub.f32 %v49_v19, %v51_v18 }
  0xad   :  { %107 = vrsqrt.f32 %v56_v20  ;;  %v55_v22 = vmax.f32 %v53_v21, 0.0 }
  0xaf   :  { %v57_v23 = vadd.f32 1e-05, %v55_v22 }
  0xb1   :  { %109 = vrsqrt.f32 %v57_v23 }
  0xb7   :  { %v108_v25 = vpop.eup %107 }
  0xb8   :  { %v64_v27 = vmul.f32 %v108_v25, %v62_v24 }
  0xba   :  { %v72_v30 = vmul.f32 %v101_v26, %v64_v27 }
  0xbb   :  { %v110_v31 = vpop.eup %109 }
  0xbc   :  { %v65_v32 = vmul.f32 %v110_v31, %v63_v29  ;;  %v80_v33 = vadd.f32 %v102_v28, %v72_v30 }
  0xbe   :  { %v73_v34 = vmul.f32 %v101_v26, %v65_v32  ;;  %82 = vst.msk [vmem:[#allocation5] sm:$0xff] %vm31_vm0, %v80_v33 }
  0xc0   :  { %v81_v35 = vadd.f32 %v102_v28, %v73_v34 }
  0xc2   :  { %83 = vst.msk [vmem:[#allocation5 + $0x8] sm:$0xff] %vm31_vm0, %v81_v35 }
  0xc3   :  { %144 = shalt.err (!%p141_p12)
}
  0xc4   :  { %s145_s5 = scalar_lea.hbm %s228_s3, 256 }
  0xc5   :  { %p146_p13 = scmp.ne.s32.totalorder %s228_s3, %s145_s5  ;;  %p149_p0 = scmp.lt.u32.totalorder %s145_s5, %s228_s3 }
  0xc7   :  { %p151_p1 = pnand %p149_p0, %p146_p13 }
  0xc9   :  { %154 = shalt.err (!%p151_p1)
}
  0xca   :  { %95 = dma.vmem_to_hbm [thread:$0]  %s90_s30, 256, %s228_s3, [#allocation4], %s160_s22, %s160_s22, %s161_s23  }
  0xcb   :  { %157 = dma.done.wait [#allocation4], 256  }
  0xcc   :  { %158 = vsyncadd [#allocation4], 4294967040 }
  0xcd   :  { %99 = vsyncpa [#allocation3], 1 }
  0xce   :  { %100 = vsyncpa [#allocation4], 1 }

</bundles_post_ra>
